<compile_context>
chip_gen: v7x
topology: tpu7x:2x2x1
jax: 0.10.0
libtpu: 0.0.40
codegen_flags: <defaults>
</compile_context>

<pallas_src>
import functools

import jax
import jax.numpy as jnp
from jax.experimental import pallas as pl
from jax.experimental.pallas import tpu as pltpu

LANES = 128


# ----------------------------- Pallas kernel --------------------------------
def simple_gru_kernel(ids_ref, slab_ref, out_ref, *, vpad, e, c):
    """ids: (N,1) i32 | slab: (R,128) f32 | out: (N,128) f32 (lane-dense)."""
    n_tok = ids_ref.shape[0]

    # ---- static row slices of the single VMEM weight slab ----
    g_table = slab_ref[0:vpad, :]                        # (Vpad,128) per-token gate preacts [r|z|n|0]
    w_head  = slab_ref[vpad:vpad + e, :]                 # (E,128)    fused fct2∘fct1 weights, lanes [0:C]
    b_gates = slab_ref[vpad + e:vpad + e + 1, :]         # (1,128)    [b_r|b_z|b_n|0] (b_hr/b_hz folded in)
    b_hn    = slab_ref[vpad + e + 1:vpad + e + 2, 0:e]   # (1,E)      hidden n-gate bias (scaled by r)
    b_head  = slab_ref[vpad + e + 2:vpad + e + 3, :]     # (1,128)    fused head bias, lanes [0:C]

    # ---- embedding gather + GRU input projection as ONE one-hot MXU matmul ----
    # (pack_params pre-multiplied embed @ W_ih.T, so the gather directly yields
    #  the gate pre-activations; no separate embedding operand or matmul.)
    ids = ids_ref[...]                                                 # (N,1) int32
    lane_id = jax.lax.broadcasted_iota(jnp.int32, (n_tok, vpad), 1)    # (N,Vpad)
    onehot = (lane_id == ids).astype(jnp.float32)                      # (N,Vpad)
    g = jnp.dot(onehot, g_table, preferred_element_type=jnp.float32) + b_gates  # (N,128)

    # ---- GRU step with h0 == 0 (single sigmoid dispatch for r and z) ----
    rz = jax.nn.sigmoid(g[:, 0:2 * e])
    r, z = rz[:, 0:e], rz[:, e:2 * e]
    n_gate = jnp.tanh(g[:, 2 * e:3 * e] + r * b_hn)      # gh_n == b_hn since h0 == 0
    h = (1.0 - z) * n_gate                                # (+ z*h0 which is 0)   (N,E)

    # ---- fused head: full 128-lane result -> unmasked lane-dense store ----
    out_ref[...] = jnp.dot(h, w_head, preferred_element_type=jnp.float32) + b_head


# ------------------------ one-time parameter packing -------------------------
def pack_params(params):
    """Re-layout PyTorch-style params into ONE dense VMEM slab (done once, off hot path)."""
    vocab, e = params["embed"].shape
    c = params["w_fct2"].shape[0]
    assert 3 * e <= LANES and c <= LANES

    # Gate weights: columns of w_ih.T are already the [r | z | n] blocks.
    w_gates = params["w_ih"].T.astype(jnp.float32)                       # (E, 3E)
    # h0 == 0 => fold b_hr, b_hz into the input biases; keep b_hn separate (scaled by r).
    b_gates = params["b_ih"].at[:2 * e].add(params["b_hh"][:2 * e])      # (3E,)
    b_hn = params["b_hh"][2 * e:]                                        # (E,)

    # Embedding is only consumed by the GRU input projection -> pre-fuse the
    # gather target: per-token gate pre-activations.
    g_table = params["embed"].astype(jnp.float32) @ w_gates              # (V, 3E)

    # fct2(fct1(.)) with no nonlinearity in between => single affine map.
    w_head = (params["w_fct1"].T @ params["w_fct2"].T).astype(jnp.float32)        # (E, C)
    b_head = (params["b_fct1"] @ params["w_fct2"].T + params["b_fct2"]).astype(jnp.float32)  # (C,)

    # Pad vocab rows to a lane multiple so the in-kernel one-hot is lane-dense.
    vpad = ((vocab + LANES - 1) // LANES) * LANES
    rows = vpad + e + 3
    rows_pad = ((rows + 7) // 8) * 8

    slab = jnp.zeros((rows_pad, LANES), jnp.float32)
    slab = slab.at[:vocab, :3 * e].set(g_table)                    # gate table (gather target)
    slab = slab.at[vpad:vpad + e, :c].set(w_head)                  # fused head weights @ lanes [0:C]
    slab = slab.at[vpad + e, :3 * e].set(b_gates.astype(jnp.float32))
    slab = slab.at[vpad + e + 1, :e].set(b_hn.astype(jnp.float32))
    slab = slab.at[vpad + e + 2, :c].set(b_head)
    return {"slab": slab, "vpad": vpad, "embedding_size": e, "context_size": c}


# ------------------------------- wrappers -------------------------------------
def simple_gru_forward_batched(token_ids, packed):
    """token_ids: (B, N) int32 -> (B, N, context_size) float32.

    grid=(B,): the weight slab's index_map is constant, so it stays VMEM-resident
    across grid steps (DMA'd once); per-step traffic is just the tiny ids/out tiles.
    The batch axis is 'parallel' so v7x's two TensorCores split it.
    """
    b, n = token_ids.shape
    e, c, vpad = packed["embedding_size"], packed["context_size"], packed["vpad"]
    slab = packed["slab"]
    rows = slab.shape[0]
    ids3 = token_ids.astype(jnp.int32)[..., None]                  # (B, N, 1)

    kernel = functools.partial(simple_gru_kernel, vpad=vpad, e=e, c=c)
    out_full = pl.pallas_call(
        kernel,
        out_shape=jax.ShapeDtypeStruct((b, n, LANES), jnp.float32),
        grid_spec=pltpu.PrefetchScalarGridSpec(
            num_scalar_prefetch=0,
            grid=(b,),
            in_specs=[
                pl.BlockSpec((None, n, 1), lambda i: (i, 0, 0)),       # per-batch token ids
                pl.BlockSpec((rows, LANES), lambda i: (0, 0)),         # weights: constant -> resident
            ],
            out_specs=pl.BlockSpec((None, n, LANES), lambda i: (i, 0, 0)),  # lane-dense store
        ),
        compiler_params=pltpu.CompilerParams(dimension_semantics=("parallel",)),
    )(ids3, slab)
    return out_full[..., :c]                                        # slice head lanes in the wrapper


def simple_gru_forward(token_ids, packed):
    """token_ids: (N,) int32. Returns (1, N, context_size) float32 (matches PyTorch)."""
    return simple_gru_forward_batched(token_ids[None, :], packed)


# --------------------------- deterministic params ----------------------------
def init_params(key, vocab_size, embedding_size, context_size):
    E, C = embedding_size, context_size
    ks = jax.random.split(key, 9)
    k_gru = 1.0 / jnp.sqrt(E)
    k_f1 = 1.0 / jnp.sqrt(E)
    k_f2 = 1.0 / jnp.sqrt(12.0)
    u = lambda k, shape, lim: jax.random.uniform(k, shape, jnp.float32, -lim, lim)
    return {
        "embed":  jax.random.normal(ks[0], (vocab_size, E), jnp.float32),
        "w_ih":   u(ks[1], (3 * E, E), k_gru),
        "w_hh":   u(ks[2], (3 * E, E), k_gru),
        "b_ih":   u(ks[3], (3 * E,), k_gru),
        "b_hh":   u(ks[4], (3 * E,), k_gru),
        "w_fct1": u(ks[5], (12, E), k_f1),
        "b_fct1": u(ks[6], (12,), k_f1),
        "w_fct2": u(ks[7], (C, 12), k_f2),
        "b_fct2": u(ks[8], (C,), k_f2),
    }


# --------------------------- pure-JAX reference -------------------------------
def reference_forward(token_ids, params):
    e = params["embed"].shape[1]
    x = jnp.take(params["embed"], token_ids, axis=0)
    h0 = jnp.zeros_like(x)
    gi = x @ params["w_ih"].T + params["b_ih"]
    gh = h0 @ params["w_hh"].T + params["b_hh"]
    r = jax.nn.sigmoid(gi[:, :e] + gh[:, :e])
    z = jax.nn.sigmoid(gi[:, e:2 * e] + gh[:, e:2 * e])
    n = jnp.tanh(gi[:, 2 * e:] + r * gh[:, 2 * e:])
    h = (1.0 - z) * n + z * h0
    y = (h @ params["w_fct1"].T + params["b_fct1"]) @ params["w_fct2"].T + params["b_fct2"]
    return y[None, :, :]


if __name__ == "__main__":
    vocab_size, embedding_size, context_size = 100, 32, 8
    N = 8  # number of context tokens fed to the model

    key = jax.random.PRNGKey(0)
    pkey, xkey, bkey = jax.random.split(key, 3)
    params = init_params(pkey, vocab_size, embedding_size, context_size)
    token_ids = jax.random.randint(xkey, (N,), 0, vocab_size, dtype=jnp.int32)

    packed = pack_params(params)                  # one-time weight re-layout

    # Module-equivalent single call: (N,) -> (1, N, C), as in the PyTorch forward.
    out = simple_gru_forward(token_ids, packed)
    jax.block_until_ready(out)
    assert out.shape == (1, N, context_size), out.shape
    ref = reference_forward(token_ids, params)
    assert jnp.allclose(out, ref, rtol=1e-4, atol=1e-4), float(jnp.abs(out - ref).max())

    # Batched path exercising the grid: weights stay VMEM-resident across batches.
    B = 4
    batch_ids = jax.random.randint(bkey, (B, N), 0, vocab_size, dtype=jnp.int32)
    out_b = simple_gru_forward_batched(batch_ids, packed)
    jax.block_until_ready(out_b)
    assert out_b.shape == (B, N, context_size), out_b.shape
    ref_b = jnp.stack([reference_forward(batch_ids[i], params)[0] for i in range(B)])
    assert jnp.allclose(out_b, ref_b, rtol=1e-4, atol=1e-4), float(jnp.abs(out_b - ref_b).max())

    print("KERNEL_OK")
</pallas_src>

<mosaic_0001>
module attributes {stable_mosaic.version = 11 : i64} {
  func.func @simple_gru_kernel(%arg0: i32, %arg1: memref<1x8x1xi32, #tpu.memory_space<vmem>>, %arg2: memref<168x128xf32, #tpu.memory_space<vmem>>, %arg3: memref<1x8x128xf32, #tpu.memory_space<vmem>>) attributes {dimension_semantics = [#tpu.dimension_semantics<parallel>], iteration_bounds = array<i64: 1>, scalar_prefetch = 0 : i64, scratch_operands = 0 : i64, tpu.core_type = #tpu.core_type<tc>, window_params = [{transform_indices = @transform_0, window_bounds = array<i64: 1, 8, 1>}, {pipeline_mode = #tpu.pipeline_mode<synchronous>, transform_indices = @transform_1, window_bounds = array<i64: 168, 128>}, {transform_indices = @transform_2, window_bounds = array<i64: 1, 8, 128>}]} {
    %c0 = arith.constant 0 : index
    %c0_0 = arith.constant 0 : index
    %0 = vector.load %arg2[%c0, %c0_0] : memref<168x128xf32, #tpu.memory_space<vmem>>, vector<128x128xf32>
    %c128 = arith.constant 128 : index
    %c0_1 = arith.constant 0 : index
    %1 = vector.load %arg2[%c128, %c0_1] : memref<168x128xf32, #tpu.memory_space<vmem>>, vector<32x128xf32>
    %c160 = arith.constant 160 : index
    %c0_2 = arith.constant 0 : index
    %2 = vector.load %arg2[%c160, %c0_2] : memref<168x128xf32, #tpu.memory_space<vmem>>, vector<1x128xf32>
    %c161 = arith.constant 161 : index
    %c0_3 = arith.constant 0 : index
    %3 = vector.load %arg2[%c161, %c0_3] : memref<168x128xf32, #tpu.memory_space<vmem>>, vector<1x32xf32>
    %c162 = arith.constant 162 : index
    %c0_4 = arith.constant 0 : index
    %4 = vector.load %arg2[%c162, %c0_4] : memref<168x128xf32, #tpu.memory_space<vmem>>, vector<1x128xf32>
    %c0_5 = arith.constant 0 : index
    %c0_6 = arith.constant 0 : index
    %c0_7 = arith.constant 0 : index
    %5 = vector.load %arg1[%c0_5, %c0_6, %c0_7] : memref<1x8x1xi32, #tpu.memory_space<vmem>>, vector<1x8x1xi32>
    %6 = vector.shape_cast %5 : vector<1x8x1xi32> to vector<8x1xi32>
    %7 = tpu.iota {dimensions = array<i32: 1>} : vector<8x128xi32>
    %8 = vector.broadcast %6 : vector<8x1xi32> to vector<8x128xi32>
    %9 = arith.cmpi eq, %7, %8 : vector<8x128xi32>
    %10 = arith.extui %9 : vector<8x128xi1> to vector<8x128xi32>
    %11 = arith.sitofp %10 : vector<8x128xi32> to vector<8x128xf32>
    %cst = arith.constant dense<0.000000e+00> : vector<8x128xf32>
    %12 = tpu.matmul %11, %0, %cst {dimension_numbers = #tpu.dot_dimension_numbers<[1], [0], [0], [1], [0, 0, 1, 1], [], []>} : vector<8x128xf32>, vector<128x128xf32>, vector<8x128xf32> -> vector<8x128xf32>
    %13 = vector.broadcast %2 : vector<1x128xf32> to vector<8x128xf32>
    %14 = arith.addf %12, %13 : vector<8x128xf32>
    %15 = vector.extract_strided_slice %14 {offsets = [0, 0], sizes = [8, 64], strides = [1, 1]} : vector<8x128xf32> to vector<8x64xf32>
    %16 = arith.negf %15 : vector<8x64xf32>
    %17 = math.exp %16 : vector<8x64xf32>
    %cst_8 = arith.constant 1.000000e+00 : f32
    %18 = vector.broadcast %cst_8 : f32 to vector<8x64xf32>
    %19 = arith.addf %18, %17 : vector<8x64xf32>
    %20 = arith.divf %18, %19 : vector<8x64xf32>
    %21 = vector.extract_strided_slice %20 {offsets = [0, 0], sizes = [8, 32], strides = [1, 1]} : vector<8x64xf32> to vector<8x32xf32>
    %22 = vector.extract_strided_slice %20 {offsets = [0, 32], sizes = [8, 32], strides = [1, 1]} : vector<8x64xf32> to vector<8x32xf32>
    %23 = vector.extract_strided_slice %14 {offsets = [0, 64], sizes = [8, 32], strides = [1, 1]} : vector<8x128xf32> to vector<8x32xf32>
    %24 = vector.broadcast %3 : vector<1x32xf32> to vector<8x32xf32>
    %25 = arith.mulf %21, %24 : vector<8x32xf32>
    %26 = arith.addf %23, %25 : vector<8x32xf32>
    %27 = math.tanh %26 : vector<8x32xf32>
    %cst_9 = arith.constant 1.000000e+00 : f32
    %28 = vector.broadcast %cst_9 : f32 to vector<8x32xf32>
    %29 = arith.subf %28, %22 : vector<8x32xf32>
    %30 = arith.mulf %29, %27 : vector<8x32xf32>
    %cst_10 = arith.constant dense<0.000000e+00> : vector<8x128xf32>
    %31 = tpu.matmul %30, %1, %cst_10 {dimension_numbers = #tpu.dot_dimension_numbers<[1], [0], [0], [1], [0, 0, 1, 1], [], []>} : vector<8x32xf32>, vector<32x128xf32>, vector<8x128xf32> -> vector<8x128xf32>
    %32 = vector.broadcast %4 : vector<1x128xf32> to vector<8x128xf32>
    %33 = arith.addf %31, %32 : vector<8x128xf32>
    %c0_11 = arith.constant 0 : index
    %c0_12 = arith.constant 0 : index
    %c0_13 = arith.constant 0 : index
    %34 = vector.load %arg3[%c0_11, %c0_12, %c0_13] : memref<1x8x128xf32, #tpu.memory_space<vmem>>, vector<1x8x128xf32>
    %35 = vector.shape_cast %34 : vector<1x8x128xf32> to vector<8x128xf32>
    %36 = vector.shape_cast %33 : vector<8x128xf32> to vector<1x8x128xf32>
    tpu.vector_store %arg3[%c0_11, %c0_12, %c0_13], %36 {strides = array<i32>} : memref<1x8x128xf32, #tpu.memory_space<vmem>>, vector<1x8x128xf32>,
    return
  }
  func.func @transform_0(%arg0: i32) -> (i32, i32, i32) {
    %c0_i32 = arith.constant 0 : i32
    %c0_i32_0 = arith.constant 0 : i32
    %c0_i32_1 = arith.constant 0 : i32
    return %arg0, %c0_i32, %c0_i32_0 : i32, i32, i32
  }
  func.func @transform_1(%arg0: i32) -> (i32, i32) {
    %c0_i32 = arith.constant 0 : i32
    %c0_i32_0 = arith.constant 0 : i32
    %c0_i32_1 = arith.constant 0 : i32
    return %c0_i32, %c0_i32_0 : i32, i32
  }
  func.func @transform_2(%arg0: i32) -> (i32, i32, i32) {
    %c0_i32 = arith.constant 0 : i32
    %c0_i32_0 = arith.constant 0 : i32
    %c0_i32_1 = arith.constant 0 : i32
    return %arg0, %c0_i32, %c0_i32_0 : i32, i32, i32
  }
}

</mosaic_0001>

<bundles_post_ra>
// kernel: tpu_custom_call.1
= control target key start
LH: loop header
LB: loop body
LE: loop exit
PB: predicated region body
PF: predicated region fallthrough
CT: control target
= control target key end

     0   :  { %7 = vsyncpa [#allocation3], 0  ;;  %s485_s0 = inlined_call_operand.vmem [shape: s32[1,8,1], index: 0, kind: input, shape index: {}]   ;;  %s486_s1 = inlined_call_operand.hbm [shape: f32[168,128], index: 1, kind: input, shape index: {}]   ;;  %s487_s2 = inlined_call_operand.hbm [shape: f32[1,8,128], index: 2, kind: output, shape index: {}]  }
   0x1   :  { %8 = vsyncpa [#allocation4], 0  ;;  %s422_s9 = smov [#allocation2]   ;;  %s374_s13 = scalar_lea.hbm %s486_s1, 2688 }
   0x2   :  { %s16_s10 = sshll.u32 %s422_s9, 4  ;;  %p375_p0 = scmp.ne.s32.totalorder %s486_s1, %s374_s13  ;;  %s17_s10 = int_to_ptr.vmem [resolvable:$true] %s16_s10 }
   0x3   :  { %p378_p1 = scmp.lt.u32.totalorder %s374_s13, %s486_s1 }
   0x5   :  { %p380_p2 = pnand %p378_p1, %p375_p0 }
   0x7   :  { %383 = shalt.err (!%p380_p2)
}
   0x8   :  { %s384_s18 = scalar_lea.vmem %s17_s10, 2688  ;;  %p389_p4 = scmp.lt.s32.totalorder %s17_s10, %s17_s10 }
   0x9   :  { %p385_p3 = scmp.ne.s32.totalorder %s17_s10, %s384_s18  ;;  %p390_p5 = scmp.lt.s32.totalorder %s384_s18, %s384_s18 }
   0xb   :  { %p391_p6 = por %p390_p5, %p389_p4 }
   0xd   :  { %p392_p7 = pnand %p391_p6, %p385_p3 }
   0xf   :  { %395 = shalt.err (!%p392_p7)
}
  0x10   :  { %s423_s19 = smov 128   ;;  %s424_s20 = smov 8  }
  0x11   :  { %22 = dma.hbm_to_vmem [thread:$0]  %s486_s1, 2688, %s17_s10, [#allocation3], %s423_s19, %s423_s19, %s424_s20  }
  0x12   :  { %418 = dma.done.wait [#allocation3], 2688  }
  0x13   :  { %419 = vsyncadd [#allocation3], 4294964608  ;;  %v425_v0 = vmov 0   ;;  %v426_v1 = vmov 0.0|0.0   ;;  %v49_v2 = vld [vmem:[%s485_s0] sm:$0xff]  ;;  %v27_v4 = vld [vmem:[#allocation2 + $0x8] sm:$0xff]  ;;  %v50_v28 = vlaneseq }
  0x14   :  { %367 = vset.pattern.permute.xlu0 %v425_v0  ;;  %326 = vmatprep.subr.bf16.mxu0 %v426_v1  ;;  %v26_v3 = vld [vmem:[#allocation2] sm:$0xff]  ;;  %v28_v6 = vld [vmem:[#allocation2 + $0x10] sm:$0xff]  ;;  %v29_v7 = vld [vmem:[#allocation2 + $0x18] sm:$0xff]  ;;  %vm427_vm0 = vmmov 0   ;;  %v428_v8 = vmov 0.0   ;;  %v429_v31 = vmov 1.0  }
  0x15   :  { %350 = vmatprep.subr.bf16.mxu1 %v426_v1  ;;  %53 = vperm.xlu0 %367, %v49_v2   ;;  %v327_v5 = vpack.c.bf16 %v27_v4, %v26_v3  ;;  %v330_v9 = vpack.c.bf16 %v29_v7, %v28_v6  ;;  %v30_v10 = vld [vmem:[#allocation2 + $0x20] sm:$0xff]  ;;  %v31_v11 = vld [vmem:[#allocation2 + $0x28] sm:$0xff]  ;;  %v32_v13 = vld [vmem:[#allocation2 + $0x30] sm:$0xff]  ;;  %v51_v29 = vand.u32 127, %v50_v28  ;;  %s430_s0 = smov 64   ;;  %s431_s1 = smov 96  }
  0x16   :  { %312 = vmatprep.mubr.msk.f32.mxu0 %vm427_vm0, %v428_v8  ;;  %323 = vmatprep.mubr.msk.f32.mxu1 %vm427_vm0, %v428_v8  ;;  %v333_v12 = vpack.c.bf16 %v31_v11, %v30_v10  ;;  %v33_v14 = vld [vmem:[#allocation2 + $0x38] sm:$0xff]  ;;  %v34_v16 = vld [vmem:[#allocation2 + $0x40] sm:$0xff]  ;;  %v35_v17 = vld [vmem:[#allocation2 + $0x48] sm:$0xff]  ;;  %vm162_vm2 = vcmask 261120   ;;  %s432_s25 = smov [#allocation5]  }
  0x17   :  { %328 = vmatpush3.bf16.msra.mxu0 %v327_v5  ;;  %v336_v15 = vpack.c.bf16 %v33_v14, %v32_v13  ;;  %v339_v18 = vpack.c.bf16 %v35_v17, %v34_v16  ;;  %v36_v19 = vld [vmem:[#allocation2 + $0x50] sm:$0xff]  ;;  %v37_v20 = vld [vmem:[#allocation2 + $0x58] sm:$0xff]  ;;  %v38_v22 = vld [vmem:[#allocation2 + $0x60] sm:$0xff]  ;;  %s242_s26 = sshll.u32 %s432_s25, 4  ;;  %s243_s26 = int_to_ptr.vmem [resolvable:$true] %s242_s26 }
  0x18   :  { %329 = vmatprep.subr.bf16.mxu0 %v426_v1  ;;  %v342_v21 = vpack.c.bf16 %v37_v20, %v36_v19  ;;  %v39_v23 = vld [vmem:[#allocation2 + $0x68] sm:$0xff]  ;;  %v40_v25 = vld [vmem:[#allocation2 + $0x70] sm:$0xff]  ;;  %v41_v26 = vld [vmem:[#allocation2 + $0x78] sm:$0xff]  ;;  %s396_s27 = scalar_lea.vmem %s243_s26, 128  ;;  %p401_p9 = scmp.lt.s32.totalorder %s243_s26, %s243_s26 }
  0x19   :  { %v345_v24 = vpack.c.bf16 %v39_v23, %v38_v22  ;;  %v348_v27 = vpack.c.bf16 %v41_v26, %v40_v25  ;;  %v252_v32 = vld [vmem:[#allocation2 + $0xa0] ss:$0 sm:$0xff]  ;;  %v255_v39 = vld [vmem:[#allocation2 + $0xa1] ss:$0 sm:$0xff]  ;;  %v43_v45 = vld [vmem:[#allocation2 + $0x88] sm:$0xff]  ;;  %p397_p8 = scmp.ne.s32.totalorder %s243_s26, %s396_s27  ;;  %p402_p10 = scmp.lt.s32.totalorder %s396_s27, %s396_s27 }
  0x1a   :  { %v42_v44 = vld [vmem:[#allocation2 + $0x80] sm:$0xff]  ;;  %v44_v46 = vld [vmem:[#allocation2 + $0x90] sm:$0xff]  ;;  %v45_v48 = vld [vmem:[#allocation2 + $0x98] sm:$0xff] }
  0x1b   :  { %331 = vmatpush3.bf16.msra.mxu0 %v330_v9  ;;  %v351_v47 = vpack.c.bf16 %v43_v45, %v42_v44  ;;  %v354_v49 = vpack.c.bf16 %v45_v48, %v44_v46  ;;  %v256_v55 = vld [vmem:[#allocation2 + $0xa2] ss:$0 sm:$0xff]  ;;  %p403_p11 = por %p402_p10, %p401_p9 }
  0x1c   :  { %332 = vmatprep.subr.bf16.mxu0 %v426_v1 }
  0x1d   :  { %352 = vmatpush3.bf16.msra.mxu1 %v351_v47  ;;  %p404_p12 = pnand %p403_p11, %p397_p8 }
  0x1e   :  { %353 = vmatprep.subr.bf16.mxu1 %v426_v1 }
  0x1f   :  { %334 = vmatpush3.bf16.msra.mxu0 %v333_v12 }
  0x20   :  { %335 = vmatprep.subr.bf16.mxu0 %v426_v1 }
  0x21   :  { %355 = vmatpush3.bf16.msra.mxu1 %v354_v49 }
  0x23   :  { %337 = vmatpush3.bf16.msra.mxu0 %v336_v15 }
  0x24   :  { %338 = vmatprep.subr.bf16.mxu0 %v426_v1 }
  0x27   :  { %340 = vmatpush3.bf16.msra.mxu0 %v339_v18 }
  0x28   :  { %341 = vmatprep.subr.bf16.mxu0 %v426_v1 }
  0x2b   :  { %343 = vmatpush3.bf16.msra.mxu0 %v342_v21 }
  0x2c   :  { %344 = vmatprep.subr.bf16.mxu0 %v426_v1 }
  0x2f   :  { %346 = vmatpush3.bf16.msra.mxu0 %v345_v24 }
  0x30   :  { %347 = vmatprep.subr.bf16.mxu0 %v426_v1 }
  0x33   :  { %349 = vmatpush3.bf16.msra.mxu0 %v348_v27 }
  0x94   :  { %v54_v30 = vpop.permute.xlu0 %53 }
  0x95   :  { %vm55_vm1 = vcmp.eq.s32.totalorder %v51_v29, %v54_v30 }
  0x96   :  { %313 = vmatmul.mubr.msk.f32.vlgmr.msra.gmra.mrb[0].mxu0 %vm55_vm1, %v429_v31 }
 0x169   :  { %v128_v33 = vpop.f32.mrb[0].mxu0 }
 0x16a   :  { %v129_v34 = vadd.f32 %v252_v32, %v128_v33  ;;  %v314_v35 = vpop.f32.mrb[1].mxu0 }
 0x16c   :  { %v254_v36 = vmul.f32 -1.442695, %v129_v34 }
 0x16e   :  { %368 = vpow2.f32 %v254_v36 }
 0x178   :  { %v369_v37 = vpop.eup %368 }
 0x179   :  { %v135_v38 = vadd.f32 1.0, %v369_v37 }
 0x17b   :  { %370 = vrcp.f32 %v135_v38 }
 0x185   :  { %v371_v40 = vpop.eup %370 }
 0x186   :  { %v142_v41 = vmul.f32 %v371_v40, %v255_v39  ;;  %v149_v51 = vsub.f32 1.0, %v371_v40 }
 0x188   :  { %144 = vrot.lane.b32.xlu0 %v142_v41, %s430_s0 }
 0x1fa   :  { %v145_v42 = vpop.permute.xlu0 %144 }
 0x1fb   :  { %v147_v43 = vadd.f32 %v145_v42, %v129_v34 }
 0x1fd   :  { %372 = vtanh.f32 %v147_v43 }
 0x207   :  { %v373_v50 = vpop.eup %372 }
 0x208   :  { %151 = vrot.lane.b32.xlu1 %v373_v50, %s431_s1 }
 0x27a   :  { %v152_v52 = vpop.permute.xlu1 %151 }
 0x27b   :  { %v154_v53 = vmul.f32 %v152_v52, %v149_v51 }
 0x27d   :  { %160 = vrot.lane.b32.xlu1 %v154_v53, %s431_s1 }
 0x2ef   :  { %v161_v54 = vpop.permute.xlu1 %160 }
 0x2f0   :  { %324 = vmatmul.mubr.msk.f32.vlgmr.msra.gmra.mrb[0].mxu1 %vm162_vm2, %v161_v54 }
 0x3c3   :  { %v231_v56 = vpop.f32.mrb[0].mxu1 }
 0x3c4   :  { %v232_v57 = vadd.f32 %v256_v55, %v231_v56  ;;  %v325_v58 = vpop.f32.mrb[1].mxu1 }
 0x3c6   :  { %235 = vst [vmem:[#allocation5] sm:$0xff] %v232_v57 }
 0x3c7   :  { %407 = shalt.err (!%p404_p12)
}
 0x3c8   :  { %s408_s30 = scalar_lea.hbm %s487_s2, 128 }
 0x3c9   :  { %p409_p13 = scmp.ne.s32.totalorder %s487_s2, %s408_s30  ;;  %p412_p0 = scmp.lt.u32.totalorder %s408_s30, %s487_s2 }
 0x3cb   :  { %p414_p1 = pnand %p412_p0, %p409_p13 }
 0x3cd   :  { %417 = shalt.err (!%p414_p1)
}
 0x3ce   :  { %245 = dma.vmem_to_hbm [thread:$0]  %s243_s26, 128, %s487_s2, [#allocation4]  }
 0x3cf   :  { %420 = dma.done.wait [#allocation4], 128  }
 0x3d0   :  { %421 = vsyncadd [#allocation4], 4294967168 }
 0x3d1   :  { %249 = vsyncpa [#allocation3], 1 }
 0x3d2   :  { %250 = vsyncpa [#allocation4], 1 }

</bundles_post_ra>
